<compile_context>
chip_gen: v7x
topology: tpu7x:2x2x1
jax: 0.10.0
libtpu: 0.0.40
codegen_flags: <defaults>
</compile_context>

<pallas_src>
import jax
import jax.numpy as jnp
from jax.experimental import pallas as pl
from jax.experimental.pallas import tpu as pltpu

MAX_TILE_B = 512   # per-step batch tile for large batches
HPAD = 128         # lane-dense padded width for all tail layers / output


def ensemble_head_kernel(x_ref, wb_ref, bias_ref, w1_ref, w2_ref, w3_ref, o_ref):
    """One batch tile of the full forward pass.

    x_ref   : (tile_b, D)   f32 flattened input tile (cast to bf16 in-kernel)
    wb_ref  : (D, HPAD)     bf16 concatenated frozen base-model weights (zero-padded cols)
    bias_ref: (4, HPAD)     f32 packed biases: rows = [bb, b1, b2, b3] (zero-padded)
    w1/w2/w3: (HPAD, HPAD)  bf16 fc_1 / fc_2 / fc_3 weights (zero-padded rows/cols)
    o_ref   : (tile_b, HPAD) f32; real logits live in columns [:10]
    """
    x = x_ref[...].astype(jnp.bfloat16)      # cast fused into the kernel (HBM reads stay f32 once)

    bb = bias_ref[0:1, :]
    b1 = bias_ref[1:2, :]
    b2 = bias_ref[2:3, :]
    b3 = bias_ref[3:4, :]

    # frozen base models + torch.cat(dim=1), fused into one bf16 MXU matmul (f32 acc)
    cat = jnp.dot(x, wb_ref[...], preferred_element_type=jnp.float32) + bb

    # x = relu(fc_1(x))
    h1 = jnp.maximum(
        jnp.dot(cat.astype(jnp.bfloat16), w1_ref[...],
                preferred_element_type=jnp.float32) + b1, 0.0)

    # x = relu(fc_2(x))
    h2 = jnp.maximum(
        jnp.dot(h1.astype(jnp.bfloat16), w2_ref[...],
                preferred_element_type=jnp.float32) + b2, 0.0)

    # x = fc_3(x)   (no activation) -- lane-dense unmasked store
    o_ref[...] = (jnp.dot(h2.astype(jnp.bfloat16), w3_ref[...],
                          preferred_element_type=jnp.float32) + b3).astype(o_ref.dtype)


def _pad_to(a, rows, cols):
    return jnp.pad(a, ((0, rows - a.shape[0]), (0, cols - a.shape[1])))


def prepare_params(params):
    """Zero-pad all tail widths to HPAD (exact: padded lanes stay identically 0),
    cast weights to bf16, and pack the four biases into one (4, HPAD) f32 array."""
    d_in = params["wb"].shape[0]
    bias = jnp.concatenate(
        [_pad_to(params["bb"], 1, HPAD),
         _pad_to(params["b1"], 1, HPAD),
         _pad_to(params["b2"], 1, HPAD),
         _pad_to(params["b3"], 1, HPAD)], axis=0).astype(jnp.float32)
    return dict(
        wb=_pad_to(params["wb"], d_in, HPAD).astype(jnp.bfloat16),
        w1=_pad_to(params["w1"], HPAD, HPAD).astype(jnp.bfloat16),
        w2=_pad_to(params["w2"], HPAD, HPAD).astype(jnp.bfloat16),
        w3=_pad_to(params["w3"], HPAD, HPAD).astype(jnp.bfloat16),
        bias=bias,
    )


def _choose_tile_b(B):
    """Pick (tile_b, n_tiles, B_pad) to avoid padded/zero batch rows and, when
    cheap, to split into >=2 (ideally 4) tiles so both v7x TensorCores engage."""
    if B <= MAX_TILE_B:
        for nt in (4, 2):
            t = B // nt
            if B % nt == 0 and t > 0 and t % 8 == 0:
                return t, nt, B
        return B, 1, B                    # single tile == full batch dim (no padding)
    nt = pl.cdiv(B, MAX_TILE_B)
    return MAX_TILE_B, nt, nt * MAX_TILE_B


@jax.jit
def ensemble_forward(x_nchw, padded):
    """x_nchw: (B, C, H, W) float32. Returns (B, 10) float32 logits."""
    B = x_nchw.shape[0]
    x2d = x_nchw.reshape(B, -1)           # keep native f32; bf16 cast happens in-kernel
    D = x2d.shape[1]

    tile_b, n_tiles, B_pad = _choose_tile_b(B)
    if B_pad != B:
        x2d = jnp.pad(x2d, ((0, B_pad - B), (0, 0)))

    resident = lambda i: (0, 0)           # weights/biases: same block every step
    in_specs = [
        pl.BlockSpec((tile_b, D), lambda i: (i, 0)),      # x (streamed, double-buffered)
        pl.BlockSpec((D, HPAD), resident),                # wb   (bf16, VMEM-resident)
        pl.BlockSpec((4, HPAD), resident),                # packed biases (f32)
        pl.BlockSpec((HPAD, HPAD), resident),             # w1 (bf16)
        pl.BlockSpec((HPAD, HPAD), resident),             # w2 (bf16)
        pl.BlockSpec((HPAD, HPAD), resident),             # w3 (bf16)
    ]
    out_specs = pl.BlockSpec((tile_b, HPAD), lambda i: (i, 0))

    # VMEM budget: resident weights + 2x double-buffered f32 x tile + 2x f32 out tile (+slack)
    weight_bytes = (D * HPAD * 2              # wb bf16
                    + 3 * HPAD * HPAD * 2     # w1/w2/w3 bf16
                    + 4 * HPAD * 4)           # packed biases f32
    vmem_bytes = (weight_bytes
                  + 2 * tile_b * D * 4        # x double buffer (f32)
                  + 2 * tile_b * HPAD * 4     # out double buffer (f32)
                  + (2 << 20))
    vmem_bytes = min(vmem_bytes, 40 * 1024 * 1024)   # v7x-safe (64 MiB / TC)

    flops = 2 * B_pad * D * HPAD + 3 * (2 * B_pad * HPAD * HPAD)
    bytes_accessed = (B_pad * D * 4           # x stream (f32, read once)
                      + weight_bytes
                      + B_pad * HPAD * 4)     # output stream (f32)

    out = pl.pallas_call(
        ensemble_head_kernel,
        out_shape=jax.ShapeDtypeStruct((B_pad, HPAD), jnp.float32),
        grid=(n_tiles,),
        in_specs=in_specs,
        out_specs=out_specs,
        compiler_params=pltpu.CompilerParams(
            dimension_semantics=("parallel",),
            vmem_limit_bytes=int(vmem_bytes),
        ),
        cost_estimate=pl.CostEstimate(
            flops=int(flops), transcendentals=0, bytes_accessed=int(bytes_accessed)),
    )(x2d, padded["wb"], padded["bias"],
      padded["w1"], padded["w2"], padded["w3"])

    return out[:B, :10]


def init_params(key, d_in, n_models):
    """Deterministic parameter init (PyTorch-style uniform +/-1/sqrt(fan_in)),
    at the true (unpadded) layer shapes."""
    ks = jax.random.split(key, 8)

    def lin(kw, kb, fan_in, fan_out):
        bound = 1.0 / jnp.sqrt(jnp.float32(fan_in))
        w = jax.random.uniform(kw, (fan_in, fan_out), jnp.float32, -bound, bound)
        b = jax.random.uniform(kb, (1, fan_out), jnp.float32, -bound, bound)
        return w, b

    # stand-in frozen base models: M linear classifiers (D -> 10), pre-concatenated
    wb, bb = lin(ks[0], ks[1], d_in, 10 * n_models)
    w1, b1 = lin(ks[2], ks[3], 10 * n_models, 15)   # fc_1
    w2, b2 = lin(ks[4], ks[5], 15, 10)              # fc_2
    w3, b3 = lin(ks[6], ks[7], 10, 10)              # fc_3
    return dict(wb=wb, bb=bb, w1=w1, b1=b1, w2=w2, b2=b2, w3=w3, b3=b3)


def _ref_forward(x, params):
    """Plain-JAX reference mirroring the kernel's numerics (bf16 matmul inputs,
    f32 accumulation), at the true unpadded shapes."""
    bf = lambda a: a.astype(jnp.bfloat16)
    x2d = x.reshape(x.shape[0], -1)
    cat = jnp.dot(bf(x2d), bf(params["wb"]),
                  preferred_element_type=jnp.float32) + params["bb"]
    h1 = jnp.maximum(jnp.dot(bf(cat), bf(params["w1"]),
                             preferred_element_type=jnp.float32) + params["b1"], 0.0)
    h2 = jnp.maximum(jnp.dot(bf(h1), bf(params["w2"]),
                             preferred_element_type=jnp.float32) + params["b2"], 0.0)
    return jnp.dot(bf(h2), bf(params["w3"]),
                   preferred_element_type=jnp.float32) + params["b3"]


if __name__ == "__main__":
    key = jax.random.PRNGKey(0)
    k_x, k_p = jax.random.split(key)

    # small CIFAR-like input: batch=2, channels=3, spatial=16x16
    B, C, H, W = 2, 3, 16, 16
    n_models = 2
    x = jax.random.normal(k_x, (B, C, H, W), jnp.float32)

    params = init_params(k_p, C * H * W, n_models)
    padded = prepare_params(params)

    out = ensemble_forward(x, padded)
    out = jax.block_until_ready(out)

    assert out.shape == (B, 10), out.shape
    assert jnp.all(jnp.isfinite(out))

    # reference check (same bf16 rounding of matmul inputs, f32 accumulation)
    ref = _ref_forward(x, params)
    assert jnp.allclose(out, ref, atol=2e-3, rtol=2e-3), float(jnp.max(jnp.abs(out - ref)))

    print("KERNEL_OK")
</pallas_src>

<mosaic_0001>
module attributes {stable_mosaic.version = 11 : i64} {
  func.func @ensemble_head_kernel(%arg0: i32, %arg1: memref<2x768xf32, #tpu.memory_space<vmem>>, %arg2: memref<768x128xbf16, #tpu.memory_space<vmem>>, %arg3: memref<4x128xf32, #tpu.memory_space<vmem>>, %arg4: memref<128x128xbf16, #tpu.memory_space<vmem>>, %arg5: memref<128x128xbf16, #tpu.memory_space<vmem>>, %arg6: memref<128x128xbf16, #tpu.memory_space<vmem>>, %arg7: memref<2x128xf32, #tpu.memory_space<vmem>>) attributes {dimension_semantics = [#tpu.dimension_semantics<parallel>], iteration_bounds = array<i64: 1>, scalar_prefetch = 0 : i64, scratch_operands = 0 : i64, tpu.core_type = #tpu.core_type<tc>, window_params = [{transform_indices = @transform_0, window_bounds = array<i64: 2, 768>}, {pipeline_mode = #tpu.pipeline_mode<synchronous>, transform_indices = @transform_1, window_bounds = array<i64: 768, 128>}, {pipeline_mode = #tpu.pipeline_mode<synchronous>, transform_indices = @transform_2, window_bounds = array<i64: 4, 128>}, {pipeline_mode = #tpu.pipeline_mode<synchronous>, transform_indices = @transform_3, window_bounds = array<i64: 128, 128>}, {pipeline_mode = #tpu.pipeline_mode<synchronous>, transform_indices = @transform_4, window_bounds = array<i64: 128, 128>}, {pipeline_mode = #tpu.pipeline_mode<synchronous>, transform_indices = @transform_5, window_bounds = array<i64: 128, 128>}, {transform_indices = @transform_6, window_bounds = array<i64: 2, 128>}]} {
    %c0 = arith.constant 0 : index
    %c0_0 = arith.constant 0 : index
    %0 = vector.load %arg1[%c0, %c0_0] : memref<2x768xf32, #tpu.memory_space<vmem>>, vector<2x768xf32>
    %1 = arith.truncf %0 : vector<2x768xf32> to vector<2x768xbf16>
    %c0_1 = arith.constant 0 : index
    %c0_2 = arith.constant 0 : index
    %2 = vector.load %arg3[%c0_1, %c0_2] : memref<4x128xf32, #tpu.memory_space<vmem>>, vector<1x128xf32>
    %c1 = arith.constant 1 : index
    %c0_3 = arith.constant 0 : index
    %3 = vector.load %arg3[%c1, %c0_3] : memref<4x128xf32, #tpu.memory_space<vmem>>, vector<1x128xf32>
    %c2 = arith.constant 2 : index
    %c0_4 = arith.constant 0 : index
    %4 = vector.load %arg3[%c2, %c0_4] : memref<4x128xf32, #tpu.memory_space<vmem>>, vector<1x128xf32>
    %c3 = arith.constant 3 : index
    %c0_5 = arith.constant 0 : index
    %5 = vector.load %arg3[%c3, %c0_5] : memref<4x128xf32, #tpu.memory_space<vmem>>, vector<1x128xf32>
    %c0_6 = arith.constant 0 : index
    %c0_7 = arith.constant 0 : index
    %6 = vector.load %arg2[%c0_6, %c0_7] : memref<768x128xbf16, #tpu.memory_space<vmem>>, vector<768x128xbf16>
    %cst = arith.constant dense<0.000000e+00> : vector<2x128xf32>
    %7 = tpu.matmul %1, %6, %cst {dimension_numbers = #tpu.dot_dimension_numbers<[1], [0], [0], [1], [0, 0, 1, 1], [], []>} : vector<2x768xbf16>, vector<768x128xbf16>, vector<2x128xf32> -> vector<2x128xf32>
    %8 = vector.broadcast %2 : vector<1x128xf32> to vector<2x128xf32>
    %9 = arith.addf %7, %8 : vector<2x128xf32>
    %10 = arith.truncf %9 : vector<2x128xf32> to vector<2x128xbf16>
    %c0_8 = arith.constant 0 : index
    %c0_9 = arith.constant 0 : index
    %11 = vector.load %arg4[%c0_8, %c0_9] : memref<128x128xbf16, #tpu.memory_space<vmem>>, vector<128x128xbf16>
    %cst_10 = arith.constant dense<0.000000e+00> : vector<2x128xf32>
    %12 = tpu.matmul %10, %11, %cst_10 {dimension_numbers = #tpu.dot_dimension_numbers<[1], [0], [0], [1], [0, 0, 1, 1], [], []>} : vector<2x128xbf16>, vector<128x128xbf16>, vector<2x128xf32> -> vector<2x128xf32>
    %13 = vector.broadcast %3 : vector<1x128xf32> to vector<2x128xf32>
    %14 = arith.addf %12, %13 : vector<2x128xf32>
    %cst_11 = arith.constant 0.000000e+00 : f32
    %15 = vector.broadcast %cst_11 : f32 to vector<2x128xf32>
    %16 = arith.maximumf %14, %15 : vector<2x128xf32>
    %17 = arith.truncf %16 : vector<2x128xf32> to vector<2x128xbf16>
    %c0_12 = arith.constant 0 : index
    %c0_13 = arith.constant 0 : index
    %18 = vector.load %arg5[%c0_12, %c0_13] : memref<128x128xbf16, #tpu.memory_space<vmem>>, vector<128x128xbf16>
    %cst_14 = arith.constant dense<0.000000e+00> : vector<2x128xf32>
    %19 = tpu.matmul %17, %18, %cst_14 {dimension_numbers = #tpu.dot_dimension_numbers<[1], [0], [0], [1], [0, 0, 1, 1], [], []>} : vector<2x128xbf16>, vector<128x128xbf16>, vector<2x128xf32> -> vector<2x128xf32>
    %20 = vector.broadcast %4 : vector<1x128xf32> to vector<2x128xf32>
    %21 = arith.addf %19, %20 : vector<2x128xf32>
    %cst_15 = arith.constant 0.000000e+00 : f32
    %22 = vector.broadcast %cst_15 : f32 to vector<2x128xf32>
    %23 = arith.maximumf %21, %22 : vector<2x128xf32>
    %24 = arith.truncf %23 : vector<2x128xf32> to vector<2x128xbf16>
    %c0_16 = arith.constant 0 : index
    %c0_17 = arith.constant 0 : index
    %25 = vector.load %arg6[%c0_16, %c0_17] : memref<128x128xbf16, #tpu.memory_space<vmem>>, vector<128x128xbf16>
    %cst_18 = arith.constant dense<0.000000e+00> : vector<2x128xf32>
    %26 = tpu.matmul %24, %25, %cst_18 {dimension_numbers = #tpu.dot_dimension_numbers<[1], [0], [0], [1], [0, 0, 1, 1], [], []>} : vector<2x128xbf16>, vector<128x128xbf16>, vector<2x128xf32> -> vector<2x128xf32>
    %27 = vector.broadcast %5 : vector<1x128xf32> to vector<2x128xf32>
    %28 = arith.addf %26, %27 : vector<2x128xf32>
    %c0_19 = arith.constant 0 : index
    %c0_20 = arith.constant 0 : index
    %29 = vector.load %arg7[%c0_19, %c0_20] : memref<2x128xf32, #tpu.memory_space<vmem>>, vector<2x128xf32>
    tpu.vector_store %arg7[%c0_19, %c0_20], %28 {strides = array<i32>} : memref<2x128xf32, #tpu.memory_space<vmem>>, vector<2x128xf32>,
    return
  }
  func.func @transform_0(%arg0: i32) -> (i32, i32) {
    %c0_i32 = arith.constant 0 : i32
    %c0_i32_0 = arith.constant 0 : i32
    return %arg0, %c0_i32 : i32, i32
  }
  func.func @transform_1(%arg0: i32) -> (i32, i32) {
    %c0_i32 = arith.constant 0 : i32
    %c0_i32_0 = arith.constant 0 : i32
    %c0_i32_1 = arith.constant 0 : i32
    return %c0_i32, %c0_i32_0 : i32, i32
  }
  func.func @transform_2(%arg0: i32) -> (i32, i32) {
    %c0_i32 = arith.constant 0 : i32
    %c0_i32_0 = arith.constant 0 : i32
    %c0_i32_1 = arith.constant 0 : i32
    return %c0_i32, %c0_i32_0 : i32, i32
  }
  func.func @transform_3(%arg0: i32) -> (i32, i32) {
    %c0_i32 = arith.constant 0 : i32
    %c0_i32_0 = arith.constant 0 : i32
    %c0_i32_1 = arith.constant 0 : i32
    return %c0_i32, %c0_i32_0 : i32, i32
  }
  func.func @transform_4(%arg0: i32) -> (i32, i32) {
    %c0_i32 = arith.constant 0 : i32
    %c0_i32_0 = arith.constant 0 : i32
    %c0_i32_1 = arith.constant 0 : i32
    return %c0_i32, %c0_i32_0 : i32, i32
  }
  func.func @transform_5(%arg0: i32) -> (i32, i32) {
    %c0_i32 = arith.constant 0 : i32
    %c0_i32_0 = arith.constant 0 : i32
    %c0_i32_1 = arith.constant 0 : i32
    return %c0_i32, %c0_i32_0 : i32, i32
  }
  func.func @transform_6(%arg0: i32) -> (i32, i32) {
    %c0_i32 = arith.constant 0 : i32
    %c0_i32_0 = arith.constant 0 : i32
    return %arg0, %c0_i32 : i32, i32
  }
}

</mosaic_0001>

<bundles_post_ra>
// kernel: ensemble_forward.1
= control target key start
LH: loop header
LB: loop body
LE: loop exit
PB: predicated region body
PF: predicated region fallthrough
CT: control target
= control target key end

     0   :  { %11 = vsyncpa [#allocation3], 0  ;;  %s1551_s0 = inlined_call_operand.vmem [shape: f32[2,768], index: 0, kind: input, shape index: {}]   ;;  %s1552_s1 = inlined_call_operand.hbm [shape: bf16[768,128], index: 1, kind: input, shape index: {}]   ;;  %s1553_s2 = inlined_call_operand.vmem [shape: f32[4,128], index: 2, kind: input, shape index: {}]   ;;  %s1554_s3 = inlined_call_operand.vmem [shape: bf16[128,128], index: 3, kind: input, shape index: {}]   ;;  %s1555_s4 = inlined_call_operand.hbm [shape: bf16[128,128], index: 4, kind: input, shape index: {}]   ;;  %s1556_s5 = inlined_call_operand.hbm [shape: bf16[128,128], index: 5, kind: input, shape index: {}]   ;;  %s1557_s6 = inlined_call_operand.hbm [shape: f32[2,128], index: 6, kind: output, shape index: {}]  }
   0x1   :  { %12 = vsyncpa [#allocation6], 0 }
   0x2   :  { %13 = vsyncpa [#allocation4], 0  ;;  %s1371_s21 = smov [#allocation5]   ;;  %s1372_s23 = smov [#allocation2]  }
   0x3   :  { %s37_s22 = sshll.u32 %s1371_s21, 4  ;;  %s21_s24 = sshll.u32 %s1372_s23, 4  ;;  %s38_s22 = int_to_ptr.vmem [resolvable:$true] %s37_s22  ;;  %s1415_s24 = int_to_ptr.vmem [resolvable:$true] %s21_s24 }
   0x4   :  { %s1277_s27 = scalar_lea.hbm %s1555_s4, 1024 }
   0x5   :  { %p1278_p0 = scmp.ne.s32.totalorder %s1555_s4, %s1277_s27  ;;  %p1281_p1 = scmp.lt.u32.totalorder %s1277_s27, %s1555_s4 }
   0x7   :  { %p1283_p2 = pnand %p1281_p1, %p1278_p0 }
   0x9   :  { %1286 = shalt.err (!%p1283_p2)
}
   0xa   :  { %s1287_s8 = scalar_lea.vmem %s38_s22, 1024  ;;  %p1292_p4 = scmp.lt.s32.totalorder %s38_s22, %s38_s22 }
   0xb   :  { %p1288_p3 = scmp.ne.s32.totalorder %s38_s22, %s1287_s8  ;;  %p1293_p5 = scmp.lt.s32.totalorder %s1287_s8, %s1287_s8 }
   0xd   :  { %p1294_p6 = por %p1293_p5, %p1292_p4 }
   0xf   :  { %p1295_p7 = pnand %p1294_p6, %p1288_p3 }
  0x11   :  { %1298 = shalt.err (!%p1295_p7)
}
  0x12   :  { %s1373_s9 = smov 64   ;;  %s1374_s10 = smov 4  }
  0x13   :  { %43 = dma.hbm_to_vmem [thread:$0]  %s1555_s4, 1024, %s38_s22, [#allocation6], %s1373_s9, %s1373_s9, %s1374_s10  }
  0x14   :  { %s1299_s15 = scalar_lea.hbm %s1552_s1, 6144 }
  0x15   :  { %p1300_p8 = scmp.ne.s32.totalorder %s1552_s1, %s1299_s15  ;;  %p1303_p9 = scmp.lt.u32.totalorder %s1299_s15, %s1552_s1 }
  0x17   :  { %p1305_p10 = pnand %p1303_p9, %p1300_p8 }
  0x19   :  { %1308 = shalt.err (!%p1305_p10)
}
  0x1a   :  { %s1309_s20 = scalar_lea.vmem %s1415_s24, 6144  ;;  %p1314_p12 = scmp.lt.s32.totalorder %s1415_s24, %s1415_s24 }
  0x1b   :  { %p1310_p11 = scmp.ne.s32.totalorder %s1415_s24, %s1309_s20  ;;  %p1315_p13 = scmp.lt.s32.totalorder %s1309_s20, %s1309_s20 }
  0x1d   :  { %p1316_p0 = por %p1315_p13, %p1314_p12 }
  0x1f   :  { %p1317_p1 = pnand %p1316_p0, %p1310_p11 }
  0x21   :  { %1320 = shalt.err (!%p1317_p1)
}
  0x22   :  { %27 = dma.hbm_to_vmem [thread:$0]  %s1552_s1, 6144, %s1415_s24, [#allocation3], %s1373_s9, %s1373_s9, %s1374_s10  }
  0x23   :  { %s1375_s22 = smov [#allocation7]   ;;  %s1321_s27 = scalar_lea.hbm %s1556_s5, 1024 }
  0x24   :  { %s49_s23 = sshll.u32 %s1375_s22, 4  ;;  %p1322_p2 = scmp.ne.s32.totalorder %s1556_s5, %s1321_s27  ;;  %s50_s23 = int_to_ptr.vmem [resolvable:$true] %s49_s23 }
  0x25   :  { %p1325_p3 = scmp.lt.u32.totalorder %s1321_s27, %s1556_s5 }
  0x27   :  { %p1327_p4 = pnand %p1325_p3, %p1322_p2 }
  0x29   :  { %1330 = shalt.err (!%p1327_p4)
}
  0x2a   :  { %s1331_s8 = scalar_lea.vmem %s50_s23, 1024  ;;  %p1336_p6 = scmp.lt.s32.totalorder %s50_s23, %s50_s23 }
  0x2b   :  { %p1332_p5 = scmp.ne.s32.totalorder %s50_s23, %s1331_s8  ;;  %p1337_p7 = scmp.lt.s32.totalorder %s1331_s8, %s1331_s8 }
  0x2d   :  { %p1338_p8 = por %p1337_p7, %p1336_p6 }
  0x2f   :  { %p1339_p9 = pnand %p1338_p8, %p1332_p5 }
  0x31   :  { %1342 = shalt.err (!%p1339_p9)
}
  0x32   :  { %55 = dma.hbm_to_vmem [thread:$0]  %s1556_s5, 1024, %s50_s23, [#allocation6], %s1373_s9, %s1373_s9, %s1374_s10  }
  0x33   :  { %1365 = dma.done.wait [#allocation3], 6144  }
  0x34   :  { %1366 = vsyncadd [#allocation3], 4294961152 }
  0x35   :  { %1367 = dma.done.wait [#allocation6], 2048  }
  0x36   :  { %1368 = vsyncadd [#allocation6], 4294965248  ;;  %v1204_v0 = vld [vmem:[#allocation2 + $0x40] sm:$0xff]   ;;  %v1208_v4 = vld [vmem:[#allocation2 + $0x48] sm:$0xff]   ;;  %v1376_v21 = vmov 1983009808   ;;  %v74_v23 = vlaneseq }
  0x37   :  { %v1205_v1 = vld [vmem:[#allocation2] sm:$0xff]   ;;  %1042 = vmatprep.subr.bf16.mxu0 %v1204_v0  ;;  %v1209_v5 = vld [vmem:[#allocation2 + $0x8] sm:$0xff]   ;;  %v1212_v8 = vld [vmem:[#allocation2 + $0x50] sm:$0xff]   ;;  %v72_v22 = vunpack.c.l.s4 %v1376_v21  ;;  %vm1378_vm0 = vmmov 0   ;;  %s1379_s24 = smov [#allocation8]  }
  0x38   :  { %v1206_v2 = vld [vmem:[#allocation2 + $0xc0] sm:$0xff]   ;;  %1043 = vmatpush3.bf16.msra.mxu0 %v1205_v1  ;;  %v1210_v6 = vld [vmem:[#allocation2 + $0xc8] sm:$0xff]   ;;  %v1213_v9 = vld [vmem:[#allocation2 + $0x10] sm:$0xff]   ;;  %v75_v29 = vshrl.u32 %v74_v23, 7  ;;  %s955_s5 = sshll.u32 %s1379_s24, 4  ;;  %s956_s5 = int_to_ptr.vmem [resolvable:$true] %s955_s5 }
  0x39   :  { %v1207_v3 = vld [vmem:[#allocation2 + $0x80] sm:$0xff]   ;;  %1064 = vmatprep.subr.bf16.mxu1 %v1206_v2  ;;  %1044 = vmatprep.subr.bf16.mxu0 %v1208_v4  ;;  %v1211_v7 = vld [vmem:[#allocation2 + $0x88] sm:$0xff]   ;;  %v1214_v10 = vld [vmem:[#allocation2 + $0xd0] sm:$0xff]   ;;  %v73_v28 = vunpack.c.0.s8 %v72_v22  ;;  %s1343_s9 = scalar_lea.vmem %s956_s5, 32  ;;  %p1348_p11 = scmp.lt.s32.totalorder %s956_s5, %s956_s5 }
  0x3a   :  { %1065 = vmatpush3.bf16.msra.mxu1 %v1207_v3  ;;  %v1215_v11 = vld [vmem:[#allocation2 + $0x90] sm:$0xff]   ;;  %v1216_v12 = vld [vmem:[#allocation2 + $0x58] sm:$0xff]   ;;  %v1220_v16 = vld [vmem:[#allocation2 + $0x60] sm:$0xff]   ;;  %p1344_p10 = scmp.ne.s32.totalorder %s956_s5, %s1343_s9  ;;  %p1349_p12 = scmp.lt.s32.totalorder %s1343_s9, %s1343_s9 }
  0x3b   :  { %1066 = vmatprep.subr.bf16.mxu1 %v1210_v6  ;;  %v1217_v13 = vld [vmem:[#allocation2 + $0x18] sm:$0xff]   ;;  %v1221_v17 = vld [vmem:[#allocation2 + $0x20] sm:$0xff]   ;;  %v1224_v20 = vld [vmem:[#allocation2 + $0x68] sm:$0xff]   ;;  %v76_v34 = vsub.s32 %v73_v28, %v75_v29 }
  0x3c   :  { %1045 = vmatpush3.bf16.msra.mxu0 %v1209_v5  ;;  %v1218_v14 = vld [vmem:[#allocation2 + $0xd8] sm:$0xff]   ;;  %v1222_v18 = vld [vmem:[#allocation2 + $0xe0] sm:$0xff]   ;;  %v1225_v24 = vld [vmem:[#allocation2 + $0x28] sm:$0xff]   ;;  %v1377_v5 = vmov 0.0   ;;  %p1350_p13 = por %p1349_p12, %p1348_p11 }
  0x3d   :  { %1046 = vmatprep.subr.bf16.mxu0 %v1212_v8  ;;  %v1219_v15 = vld [vmem:[#allocation2 + $0x98] sm:$0xff]   ;;  %v1223_v19 = vld [vmem:[#allocation2 + $0xa0] sm:$0xff]   ;;  %v1226_v25 = vld [vmem:[#allocation2 + $0xe8] sm:$0xff]  }
  0x3e   :  { %1067 = vmatpush3.bf16.msra.mxu1 %v1211_v7  ;;  %v1227_v26 = vld [vmem:[#allocation2 + $0xa8] sm:$0xff]   ;;  %v1228_v27 = vld [vmem:[#allocation2 + $0x70] sm:$0xff]   ;;  %v1232_v33 = vld [vmem:[#allocation2 + $0x78] sm:$0xff]   ;;  %p1351_p0 = pnand %p1350_p13, %p1344_p10 }
  0x3f   :  { %1068 = vmatprep.subr.bf16.mxu1 %v1214_v10  ;;  %v1229_v30 = vld [vmem:[#allocation2 + $0x30] sm:$0xff]   ;;  %v1233_v35 = vld [vmem:[#allocation2 + $0x38] sm:$0xff]   ;;  %v66_v37 = vld [vmem:[%s1551_s0] sm:$0xff] }
  0x40   :  { %1047 = vmatpush3.bf16.msra.mxu0 %v1213_v9  ;;  %v1230_v31 = vld [vmem:[#allocation2 + $0xf0] sm:$0xff]   ;;  %v1234_v36 = vld [vmem:[#allocation2 + $0xf8] sm:$0xff]   ;;  %v77_v38 = vrot.slane %v66_v37, %v76_v34  ;;  %v70_v40 = vcombine.high %v66_v37, %v66_v37  ;;  %v1236_v41 = vld [vmem:[#allocation2 + $0x140] sm:$0xff]  }
  0x41   :  { %1048 = vmatprep.subr.bf16.mxu0 %v1216_v12  ;;  %v1231_v32 = vld [vmem:[#allocation2 + $0xb0] sm:$0xff]   ;;  %v1235_v39 = vld [vmem:[#allocation2 + $0xb8] sm:$0xff]   ;;  %v1238_v47 = vld [vmem:[#allocation2 + $0x100] sm:$0xff]  }
  0x42   :  { %1069 = vmatpush3.bf16.msra.mxu1 %v1215_v11  ;;  %v85_v42 = vcombine.high %v77_v38, %v77_v38  ;;  %v84_v43 = vrot.slane %v70_v40, %v76_v34  ;;  %v101_v44 = vpack.c.bf16 %v77_v38, %v77_v38  ;;  %v1239_v49 = vld [vmem:[#allocation2 + $0x148] sm:$0xff]   ;;  %v1241_v52 = vld [vmem:[#allocation2 + $0x150] sm:$0xff]   ;;  %v1243_v54 = vld [vmem:[#allocation2 + $0x158] sm:$0xff]  }
  0x43   :  { %1070 = vmatprep.subr.bf16.mxu1 %v1218_v14  ;;  %v1240_v51 = vld [vmem:[#allocation2 + $0x108] sm:$0xff]   ;;  %v1242_v53 = vld [vmem:[#allocation2 + $0x110] sm:$0xff]   ;;  %v1244_v55 = vld [vmem:[#allocation2 + $0x118] sm:$0xff]  }
  0x44   :  { %1049 = vmatpush3.bf16.msra.mxu0 %v1217_v13  ;;  %v102_v45 = vpack.c.bf16 %v85_v42, %v85_v42  ;;  %v86_v46 = vcombine.high %v84_v43, %v84_v43  ;;  %v103_v48 = vpack.c.bf16 %v84_v43, %v84_v43  ;;  %v1245_v56 = vld [vmem:[#allocation2 + $0x160] sm:$0xff]   ;;  %v965_v57 = vld.sshfl [vmem:[%s1551_s0 + $0x8] sm:$0x33 pattern:$0x76325410]  ;;  %v1249_v63 = vld [vmem:[#allocation2 + $0x170] sm:$0xff]  }
  0x45   :  { %1050 = vmatprep.subr.bf16.mxu0 %v1220_v16  ;;  %v94_v58 = vcombine.high %v965_v57, %v965_v57  ;;  %v1246_v59 = vld [vmem:[#allocation2 + $0x120] sm:$0xff]   ;;  %v1247_v60 = vld [vmem:[#allocation2 + $0x168] sm:$0xff]   ;;  %v1250_v0 = vld [vmem:[#allocation2 + $0x130] sm:$0xff]   ;;  %v105_v3 = vpack.c.bf16 %v965_v57, %v965_v57 }
  0x46   :  { %1071 = vmatpush3.bf16.msra.mxu1 %v1219_v15  ;;  %531 = vmatprep.mubr.bf16.mxu0 %v102_v45  ;;  %v104_v50 = vpack.c.bf16 %v86_v46, %v86_v46  ;;  %v1248_v62 = vld [vmem:[#allocation2 + $0x128] sm:$0xff]   ;;  %v1251_v1 = vld [vmem:[#allocation2 + $0x178] sm:$0xff]   ;;  %v1253_v4 = vld [vmem:[%s1554_s3] sm:$0xff]  }
  0x47   :  { %1072 = vmatprep.subr.bf16.mxu1 %v1222_v18  ;;  %v106_v61 = vpack.c.bf16 %v94_v58, %v94_v58  ;;  %v1252_v2 = vld [vmem:[#allocation2 + $0x138] sm:$0xff]   ;;  %v1254_v6 = vld [vmem:[%s1554_s3 + $0x8] sm:$0xff]   ;;  %v1255_v7 = vld [vmem:[%s1554_s3 + $0x10] sm:$0xff]  }
  0x48   :  { %1051 = vmatpush3.bf16.msra.mxu0 %v1221_v17  ;;  %571 = vmatprep.mubr.bf16.mxu1 %v104_v50  ;;  %v1256_v8 = vld [vmem:[%s1554_s3 + $0x18] sm:$0xff]   ;;  %v1257_v9 = vld [vmem:[%s1554_s3 + $0x20] sm:$0xff]   ;;  %v1258_v10 = vld [vmem:[%s1554_s3 + $0x28] sm:$0xff]  }
  0x49   :  { %1052 = vmatprep.subr.bf16.mxu0 %v1224_v20  ;;  %v1259_v11 = vld [vmem:[%s1554_s3 + $0x30] sm:$0xff]   ;;  %v1260_v12 = vld [vmem:[%s1554_s3 + $0x38] sm:$0xff]   ;;  %v1261_v13 = vld [vmem:[#allocation5] sm:$0xff]  }
  0x4a   :  { %1073 = vmatpush3.bf16.msra.mxu1 %v1223_v19  ;;  %v1262_v14 = vld [vmem:[#allocation5 + $0x8] sm:$0xff]   ;;  %v1263_v15 = vld [vmem:[#allocation5 + $0x10] sm:$0xff]   ;;  %v1264_v16 = vld [vmem:[#allocation5 + $0x18] sm:$0xff]  }
  0x4b   :  { %1074 = vmatprep.subr.bf16.mxu1 %v1226_v25  ;;  %v1265_v17 = vld [vmem:[#allocation5 + $0x20] sm:$0xff]   ;;  %v1266_v18 = vld [vmem:[#allocation5 + $0x28] sm:$0xff]   ;;  %v1268_v40 = vld [vmem:[#allocation5 + $0x38] sm:$0xff]  }
  0x4c   :  { %1053 = vmatpush3.bf16.msra.mxu0 %v1225_v24  ;;  %v966_v20 = vld [vmem:[%s1553_s2] ss:$0 sm:$0xff]  ;;  %v1270_v42 = vld [vmem:[#allocation7 + $0x8] sm:$0xff]   ;;  %v1271_v43 = vld [vmem:[#allocation7 + $0x10] sm:$0xff]  }
  0x4d   :  { %1054 = vmatprep.subr.bf16.mxu0 %v1228_v27  ;;  %v1273_v45 = vld [vmem:[#allocation7 + $0x20] sm:$0xff]   ;;  %v1274_v46 = vld [vmem:[#allocation7 + $0x28] sm:$0xff]  }
  0x4e   :  { %1075 = vmatpush3.bf16.msra.mxu1 %v1227_v26  ;;  %v1024_v57 = vld [vmem:[%s1553_s2 + $0x2] ss:$0 sm:$0xff] }
  0x4f   :  { %1076 = vmatprep.subr.bf16.mxu1 %v1230_v31 }
  0x50   :  { %1055 = vmatpush3.bf16.msra.mxu0 %v1229_v30 }
  0x51   :  { %1056 = vmatprep.subr.bf16.mxu0 %v1232_v33 }
  0x52   :  { %1077 = vmatpush3.bf16.msra.mxu1 %v1231_v32 }
  0x53   :  { %1078 = vmatprep.subr.bf16.mxu1 %v1234_v36 }
  0x54   :  { %1057 = vmatpush3.bf16.msra.mxu0 %v1233_v35 }
  0x55   :  { %1086 = vmatprep.subr.bf16.mxu0 %v1236_v41  ;;  %v1269_v41 = vld [vmem:[#allocation7] sm:$0xff]  }
  0x56   :  { %1079 = vmatpush3.bf16.msra.mxu1 %v1235_v39  ;;  %v1267_v39 = vld [vmem:[#allocation5 + $0x30] sm:$0xff]  }
  0x57   :  { %532 = vmatmul.mubr.bf16.vlgmr.msra.gmra.mrb[0].mxu0 %v101_v44  ;;  %1135 = vmatprep.subr.bf16.mxu1 %v1377_v5  ;;  %v1272_v44 = vld [vmem:[#allocation7 + $0x18] sm:$0xff]  }
  0x58   :  { %1087 = vmatpush3.bf16.msra.mxu0 %v1238_v47  ;;  %611 = vmatprep.mubr.bf16.mxu0 %v106_v61  ;;  %v1015_v47 = vld [vmem:[%s1553_s2 + $0x1] ss:$0 sm:$0xff] }
  0x59   :  { %572 = vmatmul.mubr.bf16.vlgmr.msra.gmra.mrb[0].mxu1 %v103_v48  ;;  %1088 = vmatprep.subr.bf16.mxu0 %v1239_v49 }
  0x5a   :  { %1136 = vmatpush3.bf16.msra.mxu1 %v1253_v4  ;;  %1151 = vmatprep.mubr.msk.bf16.mxu1 %vm1378_vm0, %v1377_v5 }
  0x5b   :  { %1137 = vmatprep.subr.bf16.mxu1 %v1377_v5 }
  0x5c   :  { %1089 = vmatpush3.bf16.msra.mxu0 %v1240_v51 }
  0x5d   :  { %1090 = vmatprep.subr.bf16.mxu0 %v1241_v52 }
  0x5e   :  { %1138 = vmatpush3.bf16.msra.mxu1 %v1254_v6 }
  0x5f   :  { %1139 = vmatprep.subr.bf16.mxu1 %v1377_v5 }
  0x60   :  { %1091 = vmatpush3.bf16.msra.mxu0 %v1242_v53 }
  0x61   :  { %1092 = vmatprep.subr.bf16.mxu0 %v1243_v54 }
  0x62   :  { %1140 = vmatpush3.bf16.msra.mxu1 %v1255_v7 }
  0x63   :  { %1141 = vmatprep.subr.bf16.mxu1 %v1377_v5 }
  0x64   :  { %1093 = vmatpush3.bf16.msra.mxu0 %v1244_v55  ;;  %v1275_v55 = vld [vmem:[#allocation7 + $0x30] sm:$0xff]  }
  0x65   :  { %1094 = vmatprep.subr.bf16.mxu0 %v1245_v56  ;;  %v1276_v56 = vld [vmem:[#allocation7 + $0x38] sm:$0xff]  }
  0x66   :  { %1142 = vmatpush3.bf16.msra.mxu1 %v1256_v8 }
  0x67   :  { %1143 = vmatprep.subr.bf16.mxu1 %v1377_v5 }
  0x68   :  { %1095 = vmatpush3.bf16.msra.mxu0 %v1246_v59 }
  0x69   :  { %1096 = vmatprep.subr.bf16.mxu0 %v1247_v60 }
  0x6a   :  { %1144 = vmatpush3.bf16.msra.mxu1 %v1257_v9 }
  0x6b   :  { %1145 = vmatprep.subr.bf16.mxu1 %v1377_v5 }
  0x6c   :  { %1097 = vmatpush3.bf16.msra.mxu0 %v1248_v62 }
  0x6d   :  { %1098 = vmatprep.subr.bf16.mxu0 %v1249_v63 }
  0x6e   :  { %1146 = vmatpush3.bf16.msra.mxu1 %v1258_v10 }
  0x6f   :  { %1147 = vmatprep.subr.bf16.mxu1 %v1377_v5 }
  0x70   :  { %1099 = vmatpush3.bf16.msra.mxu0 %v1250_v0 }
  0x71   :  { %1100 = vmatprep.subr.bf16.mxu0 %v1251_v1  ;;  %v1033_v1 = vld [vmem:[%s1553_s2 + $0x3] ss:$0 sm:$0xff] }
  0x72   :  { %1148 = vmatpush3.bf16.msra.mxu1 %v1259_v11 }
  0x73   :  { %1149 = vmatprep.subr.bf16.mxu1 %v1377_v5 }
  0x74   :  { %1101 = vmatpush3.bf16.msra.mxu0 %v1252_v2 }
  0x75   :  { %1155 = vmatprep.subr.bf16.mxu0 %v1377_v5 }
  0x76   :  { %1150 = vmatpush3.bf16.msra.mxu1 %v1260_v12 }
  0x77   :  { %612 = vmatmul.mubr.bf16.vlgmr.msra.gmra.mrb[4].mxu0 %v105_v3  ;;  %1175 = vmatprep.subr.bf16.mxu1 %v1377_v5 }
  0x78   :  { %1171 = vmatprep.mubr.msk.bf16.mxu0 %vm1378_vm0, %v1377_v5  ;;  %1156 = vmatpush3.bf16.msra.mxu0 %v1261_v13 }
  0x79   :  { %1157 = vmatprep.subr.bf16.mxu0 %v1377_v5 }
  0x7c   :  { %1158 = vmatpush3.bf16.msra.mxu0 %v1262_v14 }
  0x7d   :  { %1159 = vmatprep.subr.bf16.mxu0 %v1377_v5 }
  0x80   :  { %1160 = vmatpush3.bf16.msra.mxu0 %v1263_v15 }
  0x81   :  { %1161 = vmatprep.subr.bf16.mxu0 %v1377_v5 }
  0x84   :  { %1162 = vmatpush3.bf16.msra.mxu0 %v1264_v16 }
  0x85   :  { %1163 = vmatprep.subr.bf16.mxu0 %v1377_v5 }
  0x88   :  { %1164 = vmatpush3.bf16.msra.mxu0 %v1265_v17 }
  0x89   :  { %1165 = vmatprep.subr.bf16.mxu0 %v1377_v5 }
  0x8c   :  { %1166 = vmatpush3.bf16.msra.mxu0 %v1266_v18 }
  0x8d   :  { %1167 = vmatprep.subr.bf16.mxu0 %v1377_v5 }
  0x90   :  { %1168 = vmatpush3.bf16.msra.mxu0 %v1267_v39 }
  0x91   :  { %1169 = vmatprep.subr.bf16.mxu0 %v1377_v5 }
  0x94   :  { %1170 = vmatpush3.bf16.msra.mxu0 %v1268_v40 }
 0x12a   :  { %v1058_v19 = vpop.f32.mrb[0].mxu0 }
 0x12b   :  { %v1059_v21 = vpop.f32.mrb[1].mxu0 }
 0x12c   :  { %v1060_v22 = vadd.f32 %v1059_v21, %v1058_v19  ;;  %v1061_v23 = vpop.f32.mrb[2].mxu0  ;;  %v1080_v24 = vpop.f32.mrb[0].mxu1 }
 0x12d   :  { %v1062_v25 = vpop.f32.mrb[3].mxu0  ;;  %v1081_v26 = vpop.f32.mrb[1].mxu1 }
 0x12e   :  { %v534_v27 = vadd.f32 %v1060_v22, %v966_v20  ;;  %v1082_v28 = vadd.f32 %v1081_v26, %v1080_v24  ;;  %v1083_v29 = vpop.f32.mrb[2].mxu1 }
 0x12f   :  { %v1084_v30 = vpop.f32.mrb[3].mxu1 }
 0x130   :  { %v574_v31 = vadd.f32 %v1082_v28, %v534_v27 }
 0x14a   :  { %v1102_v32 = vpop.f32.mrb[4].mxu0 }
 0x14b   :  { %v1103_v33 = vpop.f32.mrb[5].mxu0 }
 0x14c   :  { %v1104_v34 = vadd.f32 %v1103_v33, %v1102_v32  ;;  %v1105_v35 = vpop.f32.mrb[6].mxu0 }
 0x14d   :  { %v1106_v36 = vpop.f32.mrb[7].mxu0 }
 0x14e   :  { %v614_v37 = vadd.f32 %v1104_v34, %v574_v31 }
 0x150   :  { %v619_v38 = vpack.c.bf16 %v614_v37, %v614_v37 }
 0x152   :  { %1152 = vmatmul.mubr.bf16.vlgmr.msra.gmra.mrb[4].mxu1 %v619_v38 }
 0x153   :  { %1191 = vmatprep.mubr.msk.bf16.mxu1 %vm1378_vm0, %v1377_v5  ;;  %1176 = vmatpush3.bf16.msra.mxu1 %v1269_v41 }
 0x154   :  { %1177 = vmatprep.subr.bf16.mxu1 %v1377_v5 }
 0x157   :  { %1178 = vmatpush3.bf16.msra.mxu1 %v1270_v42 }
 0x158   :  { %1179 = vmatprep.subr.bf16.mxu1 %v1377_v5 }
 0x15b   :  { %1180 = vmatpush3.bf16.msra.mxu1 %v1271_v43 }
 0x15c   :  { %1181 = vmatprep.subr.bf16.mxu1 %v1377_v5 }
 0x15f   :  { %1182 = vmatpush3.bf16.msra.mxu1 %v1272_v44 }
 0x160   :  { %1183 = vmatprep.subr.bf16.mxu1 %v1377_v5 }
 0x163   :  { %1184 = vmatpush3.bf16.msra.mxu1 %v1273_v45 }
 0x164   :  { %1185 = vmatprep.subr.bf16.mxu1 %v1377_v5 }
 0x167   :  { %1186 = vmatpush3.bf16.msra.mxu1 %v1274_v46 }
 0x168   :  { %1187 = vmatprep.subr.bf16.mxu1 %v1377_v5 }
 0x16b   :  { %1188 = vmatpush3.bf16.msra.mxu1 %v1275_v55 }
 0x16c   :  { %1189 = vmatprep.subr.bf16.mxu1 %v1377_v5 }
 0x16f   :  { %1190 = vmatpush3.bf16.msra.mxu1 %v1276_v56 }
 0x225   :  { %v722_v48 = vpop.f32.mrb[4].mxu1 }
 0x226   :  { %v723_v49 = vadd.f32 %v1015_v47, %v722_v48  ;;  %v1153_v50 = vpop.f32.mrb[5].mxu1 }
 0x227   :  { %v725_v51 = vpop.f32.mrb[6].mxu1 }
 0x228   :  { %v728_v52 = vmax.f32 %v723_v49, 0.0  ;;  %v1154_v53 = vpop.f32.mrb[7].mxu1 }
 0x22a   :  { %v729_v54 = vpack.c.bf16 %v728_v52, %v728_v52 }
 0x22c   :  { %1172 = vmatmul.mubr.bf16.vlgmr.msra.gmra.mrb[8].mxu0 %v729_v54 }
 0x2ff   :  { %v832_v58 = vpop.f32.mrb[8].mxu0 }
 0x300   :  { %v833_v59 = vadd.f32 %v1024_v57, %v832_v58  ;;  %v1173_v60 = vpop.f32.mrb[9].mxu0 }
 0x301   :  { %v835_v61 = vpop.f32.mrb[10].mxu0 }
 0x302   :  { %v838_v62 = vmax.f32 %v833_v59, 0.0  ;;  %v1174_v63 = vpop.f32.mrb[11].mxu0 }
 0x304   :  { %v839_v0 = vpack.c.bf16 %v838_v62, %v838_v62 }
 0x306   :  { %1192 = vmatmul.mubr.bf16.vlgmr.msra.gmra.mrb[8].mxu1 %v839_v0 }
 0x3d9   :  { %v942_v2 = vpop.f32.mrb[8].mxu1 }
 0x3da   :  { %v943_v3 = vadd.f32 %v1033_v1, %v942_v2  ;;  %v1193_v4 = vpop.f32.mrb[9].mxu1 }
 0x3db   :  { %v945_v5 = vpop.f32.mrb[10].mxu1 }
 0x3dc   :  { %948 = vst [vmem:[#allocation8] sm:$0x3] %v943_v3  ;;  %v1194_v6 = vpop.f32.mrb[11].mxu1 }
 0x3dd   :  { %1354 = shalt.err (!%p1351_p0)
}
 0x3de   :  { %s1355_s2 = scalar_lea.hbm %s1557_s6, 32 }
 0x3df   :  { %p1356_p1 = scmp.ne.s32.totalorder %s1557_s6, %s1355_s2  ;;  %p1359_p2 = scmp.lt.u32.totalorder %s1355_s2, %s1557_s6 }
 0x3e1   :  { %p1361_p3 = pnand %p1359_p2, %p1356_p1 }
 0x3e3   :  { %1364 = shalt.err (!%p1361_p3)
}
 0x3e4   :  { %958 = dma.vmem_to_hbm [thread:$0]  %s956_s5, 32, %s1557_s6, [#allocation4]  }
 0x3e5   :  { %1369 = dma.done.wait [#allocation4], 32  }
 0x3e6   :  { %1370 = vsyncadd [#allocation4], 4294967264 }
 0x3e7   :  { %962 = vsyncpa [#allocation3], 1 }
 0x3e8   :  { %963 = vsyncpa [#allocation6], 1 }
 0x3e9   :  { %964 = vsyncpa [#allocation4], 1 }

</bundles_post_ra>
